<compile_context>
chip_gen: v5e
topology: v5e:2x2
jax: 0.10.0
libtpu: 0.0.40
codegen_flags: <defaults>
</compile_context>

<pallas_src>
import jax
import jax.numpy as jnp
from jax.experimental import pallas as pl
from jax.experimental.pallas import tpu as pltpu


def _round_up(x, m):
    return ((x + m - 1) // m) * m


def _choose_nk_tiles(n):
    """Pick (tm, tk, n_padded) for the two N-sized dims of `a`.

    Targets tm=256 / tk=512 (friendly to the 256x256 MXU), but among the tk
    candidates picks the one that needs the least padding of N (ties -> larger
    tk), so we never both collapse to 128 tiles *and* never pad gratuitously.
    tm, tk are 128 * 2^j, so lcm(tm, tk) == max(tm, tk).
    """
    np128 = _round_up(n, 128)
    tm = min(256, np128)
    best = None
    for tk_target in (512, 256, 128):
        tk = min(tk_target, np128)
        n_pad = _round_up(n, max(tm, tk))
        key = (n_pad, -tk)
        if best is None or key < best[0]:
            best = (key, tm, tk, n_pad)
    _, tm, tk, n_pad = best
    return tm, tk, n_pad


def _choose_tn(dp, tm, tk, ops_isize, res_isize, out_isize, budget_bytes):
    """Largest 128-multiple divisor of dp whose double-buffered set fits VMEM.

    Collapsing the n axis (tn == dp) means `a` is streamed from HBM once.
    """
    units = dp // 128
    for d in range(units, 0, -1):
        if units % d:
            continue
        tn = d * 128
        ws = (2 * tm * tk * ops_isize       # a tile (double buffered)
              + 2 * tk * tn * ops_isize     # v rhs tile
              + 2 * tm * tn * res_isize     # v residual tile
              + 2 * tm * tn * out_isize     # output tile
              + tm * tn * 4)                # f32 accumulator scratch
        if ws <= budget_bytes:
            return tn
    return 128


def gin_kernel(eps_ref, a_ref, v_ref, vres_ref, o_ref, acc_ref):
    """One (b, m, n, k) grid step.

    eps_ref : SMEM (1, 1)      epsilon scalar parameter
    a_ref   : VMEM (1, tm, tk) adjacency tile        (indexed by b, m, k)
    v_ref   : VMEM (1, tk, tn) feature tile, RHS     (indexed by b, k, n)
    vres_ref: VMEM (1, tm, tn) feature tile, residual(indexed by b, m, n)
    o_ref   : VMEM (1, tm, tn) output tile           (indexed by b, m, n)
    acc_ref : VMEM (tm, tn) f32 accumulator scratch
    """
    k = pl.program_id(3)
    nk = pl.num_programs(3)

    partial = jnp.dot(a_ref[0], v_ref[0], preferred_element_type=jnp.float32)

    # k == 0: fold the eps * v residual directly into the first partial product
    # (single store of the accumulator, no separate init pass).
    @pl.when(k == 0)
    def _():
        acc_ref[...] = eps_ref[0, 0] * vres_ref[0].astype(jnp.float32) + partial

    @pl.when(k > 0)
    def _():
        acc_ref[...] += partial

    # Finalize: write the output tile once per (b, m, n) group.
    @pl.when(k == nk - 1)
    def _():
        o_ref[0] = acc_ref[...].astype(o_ref.dtype)


def layer_gin_n(v, a, epsilon, *, compute_dtype=None, vmem_budget_bytes=40 << 20):
    """LayerGIN_N forward.  v: (B, N, D), a: (B, N, N), epsilon: (1,1) or scalar.

    compute_dtype: optional dtype (e.g. jnp.bfloat16) for the matmul operand
    stream (a and the RHS v) -> halves HBM traffic of the dominant `a` stream.
    Accumulation stays f32; the residual v and the output keep v.dtype.
    """
    B, N, D = v.shape
    assert a.shape == (B, N, N), (a.shape, (B, N, N))

    eps = jnp.asarray(epsilon, dtype=jnp.float32).reshape(1, 1)

    ops_dtype = jnp.dtype(compute_dtype) if compute_dtype is not None else jnp.dtype(v.dtype)
    res_dtype = jnp.dtype(v.dtype)
    out_dtype = jnp.dtype(v.dtype)

    tm, tk, Np = _choose_nk_tiles(N)
    Dp = _round_up(D, 128)
    tn = _choose_tn(Dp, tm, tk, ops_dtype.itemsize, res_dtype.itemsize,
                    out_dtype.itemsize, vmem_budget_bytes)

    # Cast (optionally) then pad in one fused XLA pass; skip entirely when the
    # shape is already tile-aligned so `a` is touched in HBM exactly once.
    a_mm = a if compute_dtype is None else a.astype(ops_dtype)
    if Np != N:
        a_mm = jnp.pad(a_mm, ((0, 0), (0, Np - N), (0, Np - N)))

    v_res = v
    if Np != N or Dp != D:
        v_res = jnp.pad(v, ((0, 0), (0, Np - N), (0, Dp - D)))
    v_mm = v_res if compute_dtype is None else v_res.astype(ops_dtype)

    grid = (B, Np // tm, Dp // tn, Np // tk)

    cost = pl.CostEstimate(
        flops=2 * B * Np * Np * Dp,
        transcendentals=0,
        bytes_accessed=B * (
            Np * Np * ops_dtype.itemsize * (Dp // tn)     # a, re-read per n tile
            + Np * Dp * ops_dtype.itemsize * (Np // tm)   # rhs v, re-read per m tile
            + Np * Dp * res_dtype.itemsize                # residual v
            + Np * Dp * out_dtype.itemsize),              # output
    )

    out_p = pl.pallas_call(
        gin_kernel,
        out_shape=jax.ShapeDtypeStruct((B, Np, Dp), out_dtype),
        grid_spec=pltpu.PrefetchScalarGridSpec(
            num_scalar_prefetch=0,
            grid=grid,
            in_specs=[
                pl.BlockSpec(memory_space=pltpu.MemorySpace.SMEM),         # epsilon (1,1)
                pl.BlockSpec((1, tm, tk), lambda b, m, n, k: (b, m, k)),   # a tile
                pl.BlockSpec((1, tk, tn), lambda b, m, n, k: (b, k, n)),   # v tile (matmul RHS)
                pl.BlockSpec((1, tm, tn), lambda b, m, n, k: (b, m, n)),   # v tile (residual)
            ],
            out_specs=pl.BlockSpec((1, tm, tn), lambda b, m, n, k: (b, m, n)),
            scratch_shapes=[pltpu.VMEM((tm, tn), jnp.float32)],
        ),
        compiler_params=pltpu.CompilerParams(
            dimension_semantics=("parallel", "parallel", "parallel", "arbitrary"),
            vmem_limit_bytes=48 << 20,   # <= v7x's 64 MiB physical; plenty on v5e/v6e
        ),
        cost_estimate=cost,
    )(eps, a_mm, v_mm, v_res)

    if Np != N or Dp != D:
        out_p = out_p[:, :N, :D]
    return out_p


def _rel_err(x, y):
    x = jnp.asarray(x, jnp.float32).ravel()
    y = jnp.asarray(y, jnp.float32).ravel()
    return float(jnp.linalg.norm(x - y) / (jnp.linalg.norm(y) + 1e-30))


if __name__ == "__main__":
    # Small shapes consistent with the module's forward.
    B, N, D = 2, 16, 32

    key = jax.random.PRNGKey(0)
    kv, ka = jax.random.split(key)
    v = jax.random.normal(kv, (B, N, D), dtype=jnp.float32)
    a = jax.random.normal(ka, (B, N, N), dtype=jnp.float32)

    # Parameter shape matches nn.Parameter(torch.Tensor([[0.0]])); use a nonzero
    # value so the residual path is actually exercised.
    epsilon = jnp.array([[0.25]], dtype=jnp.float32)

    out = jax.block_until_ready(layer_gin_n(v, a, epsilon))
    ref = (jnp.matmul(a, v, precision=jax.lax.Precision.HIGHEST)
           + epsilon[0, 0] * v)
    assert out.shape == ref.shape
    assert _rel_err(out, ref) < 1e-2, "mismatch vs reference (small)"

    # Larger, 128-unaligned shape: exercises pad-to-tile, multi-tile m and the
    # multi-step k accumulation path (N=600 -> Np=768, tm=tk=256 -> 3 k-steps).
    B2, N2, D2 = 2, 600, 200
    kv2, ka2 = jax.random.split(jax.random.PRNGKey(1))
    v2 = jax.random.normal(kv2, (B2, N2, D2), dtype=jnp.float32)
    a2 = jax.random.normal(ka2, (B2, N2, N2), dtype=jnp.float32)
    out2 = jax.block_until_ready(layer_gin_n(v2, a2, epsilon))
    ref2 = (jnp.matmul(a2, v2, precision=jax.lax.Precision.HIGHEST)
            + epsilon[0, 0] * v2)
    assert _rel_err(out2, ref2) < 1e-2, "mismatch vs reference (tiled)"

    # bf16 operand stream (f32 accumulation / residual / output): the HBM-bound
    # large-N configuration; compared with a loose tolerance vs the f32 ref.
    out_bf16 = jax.block_until_ready(
        layer_gin_n(v, a, epsilon, compute_dtype=jnp.bfloat16))
    assert _rel_err(out_bf16, ref) < 2e-2, "mismatch vs reference (bf16 operands)"

    print("KERNEL_OK")
</pallas_src>

<mosaic_0001>
module attributes {stable_mosaic.version = 11 : i64} {
  func.func @gin_kernel(%arg0: i32, %arg1: i32, %arg2: i32, %arg3: i32, %arg4: memref<1x1xf32, #tpu.memory_space<smem>>, %arg5: memref<1x128x128xf32, #tpu.memory_space<vmem>>, %arg6: memref<1x128x128xf32, #tpu.memory_space<vmem>>, %arg7: memref<1x128x128xf32, #tpu.memory_space<vmem>>, %arg8: memref<1x128x128xf32, #tpu.memory_space<vmem>>, %arg9: memref<128x128xf32, #tpu.memory_space<vmem>>) attributes {dimension_semantics = [#tpu.dimension_semantics<parallel>, #tpu.dimension_semantics<parallel>, #tpu.dimension_semantics<parallel>, #tpu.dimension_semantics<arbitrary>], iteration_bounds = array<i64: 2, 1, 1, 1>, scalar_prefetch = 0 : i64, scratch_operands = 1 : i64, tpu.core_type = #tpu.core_type<tc>, window_params = [{transform_indices = @transform_0, window_bounds = array<i64: 1, 1>}, {transform_indices = @transform_1, window_bounds = array<i64: 1, 128, 128>}, {transform_indices = @transform_2, window_bounds = array<i64: 1, 128, 128>}, {transform_indices = @transform_3, window_bounds = array<i64: 1, 128, 128>}, {transform_indices = @transform_4, window_bounds = array<i64: 1, 128, 128>}]} {
    %c0 = arith.constant 0 : index
    %c0_0 = arith.constant 0 : index
    %c0_1 = arith.constant 0 : index
    %0 = vector.load %arg5[%c0, %c0_0, %c0_1] : memref<1x128x128xf32, #tpu.memory_space<vmem>>, vector<1x128x128xf32>
    %1 = vector.shape_cast %0 : vector<1x128x128xf32> to vector<128x128xf32>
    %c0_2 = arith.constant 0 : index
    %c0_3 = arith.constant 0 : index
    %c0_4 = arith.constant 0 : index
    %2 = vector.load %arg6[%c0_2, %c0_3, %c0_4] : memref<1x128x128xf32, #tpu.memory_space<vmem>>, vector<1x128x128xf32>
    %3 = vector.shape_cast %2 : vector<1x128x128xf32> to vector<128x128xf32>
    %cst = arith.constant dense<0.000000e+00> : vector<128x128xf32>
    %4 = tpu.matmul %1, %3, %cst {dimension_numbers = #tpu.dot_dimension_numbers<[1], [0], [0], [1], [0, 0, 1, 1], [], []>} : vector<128x128xf32>, vector<128x128xf32>, vector<128x128xf32> -> vector<128x128xf32>
    %c0_i32 = arith.constant 0 : i32
    %5 = arith.cmpi eq, %arg3, %c0_i32 : i32
    %6 = arith.extui %5 : i1 to i32
    %c0_i32_5 = arith.constant 0 : i32
    %7 = arith.cmpi ne, %6, %c0_i32_5 : i32
    scf.if %7 {
      %c0_10 = arith.constant 0 : index
      %c0_11 = arith.constant 0 : index
      %14 = memref.load %arg4[%c0_10, %c0_11] : memref<1x1xf32, #tpu.memory_space<smem>>
      %c0_12 = arith.constant 0 : index
      %c0_13 = arith.constant 0 : index
      %c0_14 = arith.constant 0 : index
      %15 = vector.load %arg7[%c0_12, %c0_13, %c0_14] : memref<1x128x128xf32, #tpu.memory_space<vmem>>, vector<1x128x128xf32>
      %16 = vector.shape_cast %15 : vector<1x128x128xf32> to vector<128x128xf32>
      %17 = vector.broadcast %14 : f32 to vector<128x128xf32>
      %18 = arith.mulf %17, %16 : vector<128x128xf32>
      %19 = arith.addf %18, %4 : vector<128x128xf32>
      %c0_15 = arith.constant 0 : index
      %c0_16 = arith.constant 0 : index
      %20 = vector.load %arg9[%c0_15, %c0_16] : memref<128x128xf32, #tpu.memory_space<vmem>>, vector<128x128xf32>
      tpu.vector_store %arg9[%c0_15, %c0_16], %19 {strides = array<i32>} : memref<128x128xf32, #tpu.memory_space<vmem>>, vector<128x128xf32>,
    } else {
    }
    %c0_i32_6 = arith.constant 0 : i32
    %8 = arith.cmpi sgt, %arg3, %c0_i32_6 : i32
    %9 = arith.extui %8 : i1 to i32
    %c0_i32_7 = arith.constant 0 : i32
    %10 = arith.cmpi ne, %9, %c0_i32_7 : i32
    scf.if %10 {
      %c0_10 = arith.constant 0 : index
      %c0_11 = arith.constant 0 : index
      %14 = vector.load %arg9[%c0_10, %c0_11] : memref<128x128xf32, #tpu.memory_space<vmem>>, vector<128x128xf32>
      %15 = arith.addf %14, %4 : vector<128x128xf32>
      %c0_12 = arith.constant 0 : index
      %c0_13 = arith.constant 0 : index
      %16 = vector.load %arg9[%c0_12, %c0_13] : memref<128x128xf32, #tpu.memory_space<vmem>>, vector<128x128xf32>
      tpu.vector_store %arg9[%c0_12, %c0_13], %15 {strides = array<i32>} : memref<128x128xf32, #tpu.memory_space<vmem>>, vector<128x128xf32>,
    } else {
    }
    %c0_i32_8 = arith.constant 0 : i32
    %11 = arith.cmpi eq, %arg3, %c0_i32_8 : i32
    %12 = arith.extui %11 : i1 to i32
    %c0_i32_9 = arith.constant 0 : i32
    %13 = arith.cmpi ne, %12, %c0_i32_9 : i32
    scf.if %13 {
      %c0_10 = arith.constant 0 : index
      %c0_11 = arith.constant 0 : index
      %14 = vector.load %arg9[%c0_10, %c0_11] : memref<128x128xf32, #tpu.memory_space<vmem>>, vector<128x128xf32>
      %c0_12 = arith.constant 0 : index
      %c0_13 = arith.constant 0 : index
      %c0_14 = arith.constant 0 : index
      %15 = vector.load %arg8[%c0_12, %c0_13, %c0_14] : memref<1x128x128xf32, #tpu.memory_space<vmem>>, vector<1x128x128xf32>
      %16 = vector.shape_cast %15 : vector<1x128x128xf32> to vector<128x128xf32>
      %17 = vector.shape_cast %14 : vector<128x128xf32> to vector<1x128x128xf32>
      tpu.vector_store %arg8[%c0_12, %c0_13, %c0_14], %17 {strides = array<i32>} : memref<1x128x128xf32, #tpu.memory_space<vmem>>, vector<1x128x128xf32>,
    } else {
    }
    return
  }
  func.func @transform_0(%arg0: i32, %arg1: i32, %arg2: i32, %arg3: i32) -> (i32, i32) {
    %c0_i32 = arith.constant 0 : i32
    %c0_i32_0 = arith.constant 0 : i32
    %c0_i32_1 = arith.constant 0 : i32
    return %c0_i32, %c0_i32_0 : i32, i32
  }
  func.func @transform_1(%arg0: i32, %arg1: i32, %arg2: i32, %arg3: i32) -> (i32, i32, i32) {
    %c0_i32 = arith.constant 0 : i32
    return %arg0, %arg1, %arg3 : i32, i32, i32
  }
  func.func @transform_2(%arg0: i32, %arg1: i32, %arg2: i32, %arg3: i32) -> (i32, i32, i32) {
    %c0_i32 = arith.constant 0 : i32
    return %arg0, %arg3, %arg2 : i32, i32, i32
  }
  func.func @transform_3(%arg0: i32, %arg1: i32, %arg2: i32, %arg3: i32) -> (i32, i32, i32) {
    %c0_i32 = arith.constant 0 : i32
    return %arg0, %arg1, %arg2 : i32, i32, i32
  }
  func.func @transform_4(%arg0: i32, %arg1: i32, %arg2: i32, %arg3: i32) -> (i32, i32, i32) {
    %c0_i32 = arith.constant 0 : i32
    return %arg0, %arg1, %arg2 : i32, i32, i32
  }
}

</mosaic_0001>

<bundles_post_ra>
// kernel: tpu_custom_call.1
= control target key start
LH: loop header
LB: loop body
LE: loop exit
PB: predicated region body
PF: predicated region fallthrough
CT: control target
= control target key end

     0   :  { %s1389_s0 = inlined_call_operand.<no memory space> [shape: f32[1,1], index: 0, kind: input, shape index: {}]   ;;  %s1390_s1 = inlined_call_operand.hbm [shape: f32[2,128,128], index: 1, kind: input, shape index: {}]   ;;  %s1391_s2 = inlined_call_operand.hbm [shape: f32[2,128,128], index: 2, kind: input, shape index: {}]   ;;  %s1392_s3 = inlined_call_operand.hbm [shape: f32[2,128,128], index: 3, kind: input, shape index: {}]   ;;  %s1393_s4 = inlined_call_operand.hbm [shape: f32[2,128,128], index: 4, kind: output, shape index: {}]  }
   0x1   :  { %1399 = sst [smem:[#allocation19_spill]] %s1391_s2 }
   0x2   :  { %9 = sst [smem:[#allocation3]] %s1389_s0 }
   0x3   :  { %10 = vsyncpa [#allocation5], 0 }
   0x4   :  { %12 = vsyncpa [#allocation5 + $0x1], 0 }
   0x5   :  { %13 = vsyncpa [#allocation8], 0 }
   0x6   :  { %15 = vsyncpa [#allocation8 + $0x1], 0 }
   0x7   :  { %16 = vsyncpa [#allocation6], 0 }
   0x8   :  { %18 = vsyncpa [#allocation6 + $0x1], 0  ;;  %s1135_s17 = smov 0   ;;  %s1137_s18 = smov 0  }
   0x9   :  { %s1139_s19 = smov 0   ;;  %s1141_s20 = smov 0  }
   0xa   :  { %s1143_s21 = smov 0   ;;  %s1145_s22 = smov 0  }
   0xb LB: > { %1400 = sst [smem:[#allocation14_spill]] %s1089_s19  ;;  %s1166_s0 = sadd.s32 4294967295, %s1101_s22   ;;  %s1101_s22 = sphi %s1145_s22, %s24_s22   ;;  %s1097_s21 = sphi %s1143_s21, %s1416_s21   ;;  %s1093_s20 = sphi %s1141_s20, %s1415_s20   ;;  %s1089_s19 = sphi %s1139_s19, %s1414_s19   ;;  %s1085_s18 = sphi %s1137_s18, %s1418_s18   ;;  %s1081_s17 = sphi %s1135_s17, %s1417_s17  }
   0xc   : > { %1401 = sst [smem:[#allocation15_spill]] %s1097_s21  ;;  %s775_s23 = sadd.s32 4294967294, %s1101_s22  }
   0xd   : > { %1402 = sst [smem:[#allocation16_spill]] %s1101_s22  ;;  %s50_s24 = sadd.s32 1, %s1097_s21 }
   0xe   : > { %s82_s25 = sadd.s32 1, %s1089_s19  ;;  %p52_p0 = scmp.ge.s32.totalorder %s50_s24, 2 }
   0xf   : > { %p89_p1 = scmp.ne.s32.totalorder %s1089_s19, %s1085_s18  ;;  %p90_p2 = scmp.eq.s32.totalorder %s1101_s22, 0 }
  0x10   : > { %p95_p3 = scmp.ne.s32.totalorder %s1085_s18, %s1081_s17  ;;  %s1420_s24 = smov (%p52_p0, %s50_s24), 0 }
  0x11   : > { %1403 = sst [smem:[#allocation17_spill]] %s1420_s24  ;;  %p1178_p4 = por %p90_p2, %p89_p1 }
  0x12   : > { %p96_p5 = scmp.eq.s32.totalorder %s1166_s0, 0  ;;  %s75_s27 = ssub.s32 %s1097_s21, %s1420_s24 }
  0x13   : > { %p183_p6 = scmp.eq.s32.totalorder %s1166_s0, 1  ;;  %p80_p7 = scmp.eq.s32.totalorder %s75_s27, 0 }
  0x14   : > { %p1186_p8 = por %p96_p5, %p95_p3  ;;  %p189_p10 = scmp.eq.s32.totalorder %s775_s23, 1 }
  0x15   : > { %p1190_p9 = por %p183_p6, %p89_p1  ;;  %p777_p12 = scmp.ge.s32.totalorder %s1101_s22, 2 }
  0x16   : > { %s1195_s30 = scalar_select %p80_p7, %s1089_s19, %s82_s25  }
  0x17   : > { %p1197_p11 = por %p189_p10, %p95_p3  ;;  %p871_p13 = scmp.lt.s32.totalorder %s1101_s22, 2 }
  0x18   : > { %1407 = sst [smem:[#allocation18_spill]] %s1195_s30  ;;  %s212_s6 = sand.u32 1, %s1089_s19  }
  0x19   : > { %s1204_s7 = sshll.u32 %s212_s6, 7  ;;  %s797_s8 = sshll.u32 %s1097_s21, 7 }
  0x1a   : > { %p1209_p0 = pnand %p871_p13, %p1178_p4  ;;  %s237_s10 = sand.u32 1, %s1101_s22  }
  0x1b   : > { %s1410_s2 = sld [smem:[#allocation19_spill]]  ;;  %s241_s15 = scalar_lea.vmem [#allocation7], %s1204_s7 }
  0x1c   : > { %s252_s16 = sshll.u32 %s241_s15, 4  ;;  %s238_s23 = scalar_lea.sflag [#allocation8], %s237_s10  ;;  %s253_s16 = int_to_ptr.vmem [resolvable:$true] %s252_s16 }
  0x1d   : > { %s1103_s25 = smov 128   ;;  %s1104_s26 = smov 8  }
  0x1e   : > { %p787_p1 = scmp.ge.s32.totalorder %s1101_s22, 1  ;;  %p285_p2 = scmp.lt.s32.totalorder %s1101_s22, 3 }
  0x1f   : > { %s213_s10 = scalar_lea.sflag [#allocation5], %s212_s6  ;;  %s274_s21 = scalar_lea.hbm %s1392_s3, %s797_s8 }
  0x20   : > { %p1222_p3 = pnand %p787_p1, %p285_p2  ;;  %s275_s30 = sshll.u32 %s274_s21, 4  ;;  %s276_s30 = int_to_ptr.hbm [resolvable:$true] %s275_s30 }
  0x21   : > { %s249_s13 = scalar_lea.hbm %s1410_s2, %s797_s8  ;;  %s216_s2 = scalar_lea.vmem [#allocation4], %s1204_s7 }
  0x22   : > { %s250_s14 = sshll.u32 %s249_s13, 4  ;;  %s224_s13 = scalar_lea.hbm %s1390_s1, %s797_s8  ;;  %s251_s14 = int_to_ptr.hbm [resolvable:$true] %s250_s14 }
  0x23   : > { %863 = dma.hbm_to_vmem [thread:$0]  (!%p1209_p0), %s251_s14, 2048, %s253_s16, %s238_s23, %s1103_s25, %s1103_s25, %s1104_s26  }
  0x24   : > { %s225_s15 = sshll.u32 %s224_s13, 4  ;;  %s227_s24 = sshll.u32 %s216_s2, 4  ;;  %s226_s15 = int_to_ptr.hbm [resolvable:$true] %s225_s15  ;;  %s228_s24 = int_to_ptr.vmem [resolvable:$true] %s227_s24 }
  0x25   : > { %860 = dma.hbm_to_vmem [thread:$0]  (!%p1209_p0), %s226_s15, 2048, %s228_s24, %s213_s10, %s1103_s25, %s1103_s25, %s1104_s26  }
  0x26   : > { %s266_s19 = scalar_lea.vmem [#allocation9], %s1204_s7  ;;  %289 = sbr.rel (%p1222_p3) target bundleno = 242 (0xf2), region = 36 }
  0x27   : > { %s277_s22 = sshll.u32 %s266_s19, 4  ;;  %s1241_s2 = sand.u32 (!%p1222_p3), 1, %s1085_s18   ;;  %s278_s22 = int_to_ptr.vmem [resolvable:$true] %s277_s22 }
  0x28   : > { %866 = dma.hbm_to_vmem [thread:$0]  (!%p1209_p0), %s276_s30, 2048, %s278_s22, %s238_s23, %s1103_s25, %s1103_s25, %s1104_s26  }
  0x29   : > { %s1244_s24 = sshll.u32 (!%p1222_p3), %s1241_s2, 7  ;;  %s292_s6 = scalar_lea.sflag (!%p1222_p3), [#allocation5], %s1241_s2 }
  0x2a   : > { %s1248_s21 = scalar_lea.vmem (!%p1222_p3), [#allocation4], %s1244_s24 }
  0x2b   : > { %1068 = dma.done.wait (%p1186_p8), %s292_s6, 2048  }
  0x2c   : > { %1070 = vsyncadd (%p1186_p8), %s292_s6, 4294965248  ;;  %s301_s19 = sand.u32 1, %s1166_s0   ;;  %s1256_s30 = scalar_lea.vmem [#allocation7], %s1244_s24 }
  0x2d   : > { %s302_s22 = scalar_lea.sflag [#allocation8], %s301_s19 }
  0x2e   : > { %1072 = dma.done.wait (%p1186_p8), %s302_s22, 4096  }
  0x2f   : > { %1074 = vsyncadd (%p1186_p8), %s302_s22, 4294963200  ;;  %v386_v0 = vld [vmem:[%s1256_s30 + $0x78] sm:$0xff]  ;;  %v385_v1 = vld [vmem:[%s1256_s30 + $0x70] sm:$0xff]  ;;  %s456_s0 = sld [smem:[#allocation3]]  ;;  %s1295_s28 = scalar_lea.vmem [#allocation9], %s1244_s24 }
  0x30   : > { %802 = vmatpush.msra.mxu2 %v386_v0  ;;  %803 = vmatpush.msra.mxu3 %v386_v0  ;;  %v384_v2 = vld [vmem:[%s1256_s30 + $0x68] sm:$0xff]  ;;  %v383_v3 = vld [vmem:[%s1256_s30 + $0x60] sm:$0xff]  ;;  %v382_v4 = vld [vmem:[%s1256_s30 + $0x58] sm:$0xff]  ;;  %s1310_s7 = scalar_lea.vmem [#allocation10], %s1244_s24  ;;  %s800_s8 = sshll.u32 %s1093_s20, 7 }
  0x31   : > { %387 = vmatpush.msra.mxu0 %v386_v0  ;;  %801 = vmatpush.msra.mxu1 %v386_v0  ;;  %v381_v5 = vld [vmem:[%s1256_s30 + $0x50] sm:$0xff]  ;;  %v380_v6 = vld [vmem:[%s1256_s30 + $0x48] sm:$0xff]  ;;  %v379_v7 = vld [vmem:[%s1256_s30 + $0x40] sm:$0xff]  ;;  %s624_s25 = scalar_lea.hbm %s1393_s4, %s800_s8  ;;  %s625_s20 = sshll.u32 %s1310_s7, 4  ;;  %s626_s20 = int_to_ptr.vmem [resolvable:$true] %s625_s20 }
  0x32   : > { %805 = vmatpush.msra.mxu2 %v385_v1  ;;  %806 = vmatpush.msra.mxu3 %v385_v1  ;;  %v378_v8 = vld [vmem:[%s1256_s30 + $0x38] sm:$0xff]  ;;  %v377_v9 = vld [vmem:[%s1256_s30 + $0x30] sm:$0xff]  ;;  %v376_v10 = vld [vmem:[%s1256_s30 + $0x28] sm:$0xff]  ;;  %s627_s26 = sshll.u32 %s624_s25, 4  ;;  %s610_s27 = scalar_lea.sflag [#allocation6], %s1241_s2  ;;  %s628_s26 = int_to_ptr.hbm [resolvable:$true] %s627_s26 }
  0x33   : > { %388 = vmatpush.msra.mxu0 %v385_v1  ;;  %804 = vmatpush.msra.mxu1 %v385_v1  ;;  %v375_v11 = vld [vmem:[%s1256_s30 + $0x20] sm:$0xff]  ;;  %v374_v12 = vld [vmem:[%s1256_s30 + $0x18] sm:$0xff]  ;;  %v373_v13 = vld [vmem:[%s1256_s30 + $0x10] sm:$0xff]  ;;  %s1029_s11 = sshra.s32 %s628_s26, 4  ;;  %s1035_s10 = scalar_lea.hbm %s1393_s4, 256  ;;  %s1030_s11 = int_to_ptr.hbm [resolvable:$true] %s1029_s11 }
  0x34   : > { %808 = vmatpush.msra.mxu2 %v384_v2  ;;  %809 = vmatpush.msra.mxu3 %v384_v2  ;;  %v372_v14 = vld [vmem:[%s1256_s30 + $0x8] sm:$0xff]  ;;  %v371_v15 = vld [vmem:[%s1256_s30] sm:$0xff]  ;;  %v365_v24 = vld [vmem:[%s1248_s21 + $0x50] sm:$0xff]  ;;  %s1031_s12 = scalar_lea.hbm %s1030_s11, 128  ;;  %p1036_p7 = scmp.lt.s32.totalorder %s1030_s11, %s1393_s4 }
  0x35   : > { %389 = vmatpush.msra.mxu0 %v384_v2  ;;  %807 = vmatpush.msra.mxu1 %v384_v2  ;;  %v363_v16 = vld [vmem:[%s1248_s21 + $0x40] sm:$0xff]  ;;  %v364_v20 = vld [vmem:[%s1248_s21 + $0x48] sm:$0xff]  ;;  %v369_v25 = vld [vmem:[%s1248_s21 + $0x70] sm:$0xff]  ;;  %v1298_v33 = vstv %s456_s0  ;;  %p1032_p4 = scmp.ne.s32.totalorder %s1030_s11, %s1031_s12  ;;  %p1037_p8 = scmp.lt.s32.totalorder %s1035_s10, %s1031_s12 }
  0x36   : > { %811 = vmatpush.msra.mxu2 %v383_v3  ;;  %812 = vmatpush.msra.mxu3 %v383_v3  ;;  %v367_v17 = vld [vmem:[%s1248_s21 + $0x60] sm:$0xff]  ;;  %v368_v21 = vld [vmem:[%s1248_s21 + $0x68] sm:$0xff]  ;;  %v357_v26 = vld [vmem:[%s1248_s21 + $0x10] sm:$0xff] }
  0x37   : > { %390 = vmatpush.msra.mxu0 %v383_v3  ;;  %810 = vmatpush.msra.mxu1 %v383_v3  ;;  %v355_v18 = vld [vmem:[%s1248_s21] sm:$0xff]  ;;  %v356_v22 = vld [vmem:[%s1248_s21 + $0x8] sm:$0xff]  ;;  %v361_v27 = vld [vmem:[%s1248_s21 + $0x30] sm:$0xff]  ;;  %p1033_p5 = pnand %p1032_p4, %p1190_p9  ;;  %p1038_p10 = por %p1037_p8, %p1036_p7 }
  0x38   : > { %814 = vmatpush.msra.mxu2 %v382_v4  ;;  %815 = vmatpush.msra.mxu3 %v382_v4  ;;  %v359_v19 = vld [vmem:[%s1248_s21 + $0x20] sm:$0xff]  ;;  %v360_v23 = vld [vmem:[%s1248_s21 + $0x28] sm:$0xff]  ;;  %v366_v28 = vld [vmem:[%s1248_s21 + $0x58] sm:$0xff] }
  0x39   : > { %391 = vmatpush.msra.mxu0 %v382_v4  ;;  %813 = vmatpush.msra.mxu1 %v382_v4  ;;  %v370_v29 = vld [vmem:[%s1248_s21 + $0x78] sm:$0xff]  ;;  %v457_v32 = vld [vmem:[%s1295_s28] sm:$0xff]  ;;  %v458_v45 = vld [vmem:[%s1295_s28 + $0x8] sm:$0xff]  ;;  %p1034_p6 = pneg %p1033_p5 }
  0x3a   : > { %817 = vmatpush.msra.mxu2 %v381_v5  ;;  %818 = vmatpush.msra.mxu3 %v381_v5  ;;  %v358_v30 = vld [vmem:[%s1248_s21 + $0x18] sm:$0xff]  ;;  %v461_v34 = vld [vmem:[%s1295_s28 + $0x20] sm:$0xff]  ;;  %v474_v35 = vmul.f32 %v1298_v33, %v457_v32  ;;  %v462_v46 = vld [vmem:[%s1295_s28 + $0x28] sm:$0xff]  ;;  %v475_v51 = vmul.f32 %v1298_v33, %v458_v45 }
  0x3b   : > { %392 = vmatpush.msra.mxu0 %v381_v5  ;;  %816 = vmatpush.msra.mxu1 %v381_v5  ;;  %v362_v31 = vld [vmem:[%s1248_s21 + $0x38] sm:$0xff]  ;;  %v478_v36 = vmul.f32 %v1298_v33, %v461_v34  ;;  %v465_v37 = vld [vmem:[%s1295_s28 + $0x40] sm:$0xff]  ;;  %v479_v52 = vmul.f32 %v1298_v33, %v462_v46  ;;  %v466_v53 = vld [vmem:[%s1295_s28 + $0x48] sm:$0xff]  ;;  %p1039_p13 = pnand %p1038_p10, %p1034_p6 }
  0x3c   : > { %820 = vmatpush.msra.mxu2 %v380_v6  ;;  %821 = vmatpush.msra.mxu3 %v380_v6  ;;  %v469_v38 = vld [vmem:[%s1295_s28 + $0x60] sm:$0xff]  ;;  %v482_v43 = vmul.f32 %v1298_v33, %v465_v37  ;;  %v470_v54 = vld [vmem:[%s1295_s28 + $0x68] sm:$0xff]  ;;  %v483_v59 = vmul.f32 %v1298_v33, %v466_v53  ;;  %v459_v61 = vld [vmem:[%s1295_s28 + $0x10] sm:$0xff] }
  0x3d   : > { %393 = vmatpush.msra.mxu0 %v380_v6  ;;  %819 = vmatpush.msra.mxu1 %v380_v6  ;;  %v486_v44 = vmul.f32 %v1298_v33, %v469_v38  ;;  %v487_v60 = vmul.f32 %v1298_v33, %v470_v54  ;;  %v463_v62 = vld [vmem:[%s1295_s28 + $0x30] sm:$0xff]  ;;  %v476_v3 = vmul.f32 %v1298_v33, %v459_v61 }
  0x3e   : > { %823 = vmatpush.msra.mxu2 %v379_v7  ;;  %824 = vmatpush.msra.mxu3 %v379_v7  ;;  %v480_v4 = vmul.f32 %v1298_v33, %v463_v62  ;;  %v467_v5 = vld [vmem:[%s1295_s28 + $0x50] sm:$0xff] }
  0x3f   : > { %394 = vmatpush.msra.mxu0 %v379_v7  ;;  %822 = vmatpush.msra.mxu1 %v379_v7  ;;  %v471_v6 = vld [vmem:[%s1295_s28 + $0x70] sm:$0xff] }
  0x40   : > { %826 = vmatpush.msra.mxu2 %v378_v8  ;;  %827 = vmatpush.msra.mxu3 %v378_v8 }
  0x41   : > { %395 = vmatpush.msra.mxu0 %v378_v8  ;;  %825 = vmatpush.msra.mxu1 %v378_v8 }
  0x42   : > { %829 = vmatpush.msra.mxu2 %v377_v9  ;;  %830 = vmatpush.msra.mxu3 %v377_v9 }
  0x43   : > { %396 = vmatpush.msra.mxu0 %v377_v9  ;;  %828 = vmatpush.msra.mxu1 %v377_v9 }
  0x44   : > { %832 = vmatpush.msra.mxu2 %v376_v10  ;;  %833 = vmatpush.msra.mxu3 %v376_v10 }
  0x45   : > { %397 = vmatpush.msra.mxu0 %v376_v10  ;;  %831 = vmatpush.msra.mxu1 %v376_v10 }
  0x46   : > { %835 = vmatpush.msra.mxu2 %v375_v11  ;;  %836 = vmatpush.msra.mxu3 %v375_v11 }
  0x47   : > { %398 = vmatpush.msra.mxu0 %v375_v11  ;;  %834 = vmatpush.msra.mxu1 %v375_v11  ;;  %v484_v11 = vmul.f32 %v1298_v33, %v467_v5 }
  0x48   : > { %838 = vmatpush.msra.mxu2 %v374_v12  ;;  %839 = vmatpush.msra.mxu3 %v374_v12 }
  0x49   : > { %399 = vmatpush.msra.mxu0 %v374_v12  ;;  %837 = vmatpush.msra.mxu1 %v374_v12  ;;  %v488_v12 = vmul.f32 %v1298_v33, %v471_v6 }
  0x4a   : > { %841 = vmatpush.msra.mxu2 %v373_v13  ;;  %842 = vmatpush.msra.mxu3 %v373_v13 }
  0x4b   : > { %400 = vmatpush.msra.mxu0 %v373_v13  ;;  %840 = vmatpush.msra.mxu1 %v373_v13  ;;  %v460_v13 = vld [vmem:[%s1295_s28 + $0x18] sm:$0xff] }
  0x4c   : > { %844 = vmatpush.msra.mxu2 %v372_v14  ;;  %845 = vmatpush.msra.mxu3 %v372_v14 }
  0x4d   : > { %401 = vmatpush.msra.mxu0 %v372_v14  ;;  %843 = vmatpush.msra.mxu1 %v372_v14  ;;  %v464_v14 = vld [vmem:[%s1295_s28 + $0x38] sm:$0xff] }
  0x4e   : > { %847 = vmatpush.msra.mxu2 %v371_v15  ;;  %848 = vmatpush.msra.mxu3 %v371_v15 }
  0x4f   : > { %427 = vmatmul.f32.vlgmr.msra.gmra.mxu2 %v363_v16  ;;  %439 = vmatmul.f32.vlgmr.msra.gmra.mxu3 %v367_v17 }
  0x50   : > { %402 = vmatpush.msra.mxu0 %v371_v15  ;;  %846 = vmatpush.msra.mxu1 %v371_v15 }
  0x51   : > { %403 = vmatmul.f32.vlgmr.msra.gmra.mxu0 %v355_v18  ;;  %415 = vmatmul.f32.vlgmr.msra.gmra.mxu1 %v359_v19  ;;  %v477_v19 = vmul.f32 %v1298_v33, %v460_v13 }
  0x57   : > { %430 = vmatmul.f32.gmra.mxu2 %v364_v20  ;;  %442 = vmatmul.f32.gmra.mxu3 %v368_v21  ;;  %v481_v20 = vmul.f32 %v1298_v33, %v464_v14  ;;  %v468_v21 = vld [vmem:[%s1295_s28 + $0x58] sm:$0xff] }
  0x59   : > { %406 = vmatmul.f32.gmra.mxu0 %v356_v22  ;;  %418 = vmatmul.f32.gmra.mxu1 %v360_v23  ;;  %v472_v22 = vld [vmem:[%s1295_s28 + $0x78] sm:$0xff] }
  0x5f   : > { %433 = vmatmul.f32.gmra.mxu2 %v365_v24  ;;  %445 = vmatmul.f32.gmra.mxu3 %v369_v25 }
  0x61   : > { %409 = vmatmul.f32.gmra.mxu0 %v357_v26  ;;  %421 = vmatmul.f32.gmra.mxu1 %v361_v27  ;;  %v485_v27 = vmul.f32 %v1298_v33, %v468_v21 }
  0x67   : > { %436 = vmatmul.f32.gmra.mxu2 %v366_v28  ;;  %448 = vmatmul.f32.gmra.mxu3 %v370_v29  ;;  %v489_v28 = vmul.f32 %v1298_v33, %v472_v22 }
  0x69   : > { %412 = vmatmul.f32.gmra.mxu0 %v358_v30  ;;  %424 = vmatmul.f32.gmra.mxu1 %v362_v31 }
  0xce   : > { %v404_v39 = vpop.f32.mrf.mxu0  ;;  %v416_v40 = vpop.f32.mrf.mxu1 }
  0xcf   : > { %v490_v41 = vadd.f32 %v474_v35, %v404_v39  ;;  %v494_v42 = vadd.f32 %v478_v36, %v416_v40 }
  0xd1   : > { %593 = vst [vmem:[%s1310_s7] sm:$0xff] %v490_v41 }
  0xd2   : > { %597 = vst [vmem:[%s1310_s7 + $0x20] sm:$0xff] %v494_v42  ;;  %v428_v47 = vpop.f32.mrf.mxu2  ;;  %v440_v48 = vpop.f32.mrf.mxu3 }
  0xd3   : > { %v498_v49 = vadd.f32 %v482_v43, %v428_v47  ;;  %v502_v50 = vadd.f32 %v486_v44, %v440_v48 }
  0xd5   : > { %601 = vst [vmem:[%s1310_s7 + $0x40] sm:$0xff] %v498_v49 }
  0xd6   : > { %605 = vst [vmem:[%s1310_s7 + $0x60] sm:$0xff] %v502_v50  ;;  %v407_v55 = vpop.f32.mrf.mxu0  ;;  %v419_v56 = vpop.f32.mrf.mxu1 }
  0xd7   : > { %v491_v57 = vadd.f32 %v475_v51, %v407_v55  ;;  %v495_v58 = vadd.f32 %v479_v52, %v419_v56 }
  0xd9   : > { %594 = vst [vmem:[%s1310_s7 + $0x8] sm:$0xff] %v491_v57 }
  0xda   : > { %598 = vst [vmem:[%s1310_s7 + $0x28] sm:$0xff] %v495_v58  ;;  %v431_v63 = vpop.f32.mrf.mxu2  ;;  %v443_v0 = vpop.f32.mrf.mxu3 }
  0xdb   : > { %v499_v1 = vadd.f32 %v483_v59, %v431_v63  ;;  %v503_v2 = vadd.f32 %v487_v60, %v443_v0 }
  0xdd   : > { %602 = vst [vmem:[%s1310_s7 + $0x48] sm:$0xff] %v499_v1 }
  0xde   : > { %606 = vst [vmem:[%s1310_s7 + $0x68] sm:$0xff] %v503_v2  ;;  %v410_v7 = vpop.f32.mrf.mxu0  ;;  %v422_v8 = vpop.f32.mrf.mxu1 }
  0xdf   : > { %v492_v9 = vadd.f32 %v476_v3, %v410_v7  ;;  %v496_v10 = vadd.f32 %v480_v4, %v422_v8 }
  0xe1   : > { %595 = vst [vmem:[%s1310_s7 + $0x10] sm:$0xff] %v492_v9 }
  0xe2   : > { %599 = vst [vmem:[%s1310_s7 + $0x30] sm:$0xff] %v496_v10  ;;  %v434_v15 = vpop.f32.mrf.mxu2  ;;  %v446_v16 = vpop.f32.mrf.mxu3 }
  0xe3   : > { %v500_v17 = vadd.f32 %v484_v11, %v434_v15  ;;  %v504_v18 = vadd.f32 %v488_v12, %v446_v16 }
  0xe5   : > { %603 = vst [vmem:[%s1310_s7 + $0x50] sm:$0xff] %v500_v17 }
  0xe6   : > { %607 = vst [vmem:[%s1310_s7 + $0x70] sm:$0xff] %v504_v18  ;;  %v413_v23 = vpop.f32.mrf.mxu0  ;;  %v425_v24 = vpop.f32.mrf.mxu1 }
  0xe7   : > { %v493_v25 = vadd.f32 %v477_v19, %v413_v23  ;;  %v497_v26 = vadd.f32 %v481_v20, %v425_v24 }
  0xe9   : > { %596 = vst [vmem:[%s1310_s7 + $0x18] sm:$0xff] %v493_v25 }
  0xea   : > { %600 = vst [vmem:[%s1310_s7 + $0x38] sm:$0xff] %v497_v26  ;;  %v437_v29 = vpop.f32.mrf.mxu2  ;;  %v449_v30 = vpop.f32.mrf.mxu3 }
  0xeb   : > { %v501_v31 = vadd.f32 %v485_v27, %v437_v29  ;;  %v505_v32 = vadd.f32 %v489_v28, %v449_v30 }
  0xed   : > { %604 = vst [vmem:[%s1310_s7 + $0x58] sm:$0xff] %v501_v31 }
  0xee   : > { %608 = vst [vmem:[%s1310_s7 + $0x78] sm:$0xff] %v505_v32 }
  0xef   : > { %1042 = shalt.err (!%p1039_p13)
}
  0xf0   : > { %s1105_s2 = smov 128   ;;  %s1106_s24 = smov 8  }
  0xf1   : > { %855 = dma.vmem_to_hbm [thread:$0]  (%p1190_p9), %s626_s20, 2048, %s628_s26, %s610_s27, %s1105_s2, %s1105_s2, %s1106_s24  }
  0xf2 PF: > { %s1412_s6 = sld [smem:[#allocation16_spill]]  ;;  %s642_s21 = sand.u32 1, %s1081_s17  }
  0xf3   : > { %p868_p0 = pnand %p777_p12, %p1197_p11  ;;  %s643_s19 = scalar_lea.sflag [#allocation6], %s642_s21 }
  0xf5   : > { %p869_p1 = pneg %p868_p0 }
  0xf7   : > { %1076 = dma.done.wait (%p869_p1), %s643_s19, 2048  }
  0xf8   : > { %1078 = vsyncadd (%p869_p1), %s643_s19, 4294965248  ;;  %s24_s22 = sadd.s32 1, %s1412_s6   ;;  %s1413_s30 = sld [smem:[#allocation14_spill]] }
  0xf9   : > { %p21_p2 = scmp.ge.s32.totalorder %s24_s22, 4   ;;  %s1414_s19 = sld [smem:[#allocation18_spill]] }
  0xfa   : > { %s1415_s20 = sld [smem:[#allocation15_spill]]  ;;  %s1417_s17 = smov %s1085_s18 }
  0xfb   : > { %s1416_s21 = sld [smem:[#allocation17_spill]]  ;;  %23 = sbr.rel (!%p21_p2) target bundleno = 11 (0xb), region = 117 }
  0xfe   : > { %s1418_s18 = smov %s1413_s30 }
 0x100   :  { %649 = vsyncpa [#allocation5], 1 }
 0x101   :  { %651 = vsyncpa [#allocation5 + $0x1], 1 }
 0x102   :  { %652 = vsyncpa [#allocation8], 1 }
 0x103   :  { %654 = vsyncpa [#allocation8 + $0x1], 1 }
 0x104   :  { %655 = vsyncpa [#allocation6], 1 }
 0x105   :  { %657 = vsyncpa [#allocation6 + $0x1], 1 }

</bundles_post_ra>
